<compile_context>
chip_gen: v7x
topology: tpu7x:2x2x1
jax: 0.10.0
libtpu: 0.0.40
codegen_flags: <defaults>
</compile_context>

<pallas_src>
import functools

import jax
import jax.numpy as jnp
from jax.experimental import pallas as pl
from jax.experimental.pallas import tpu as pltpu


def _round_up(x, m):
    return (x + m - 1) // m * m


def _cdiv(a, b):
    return (a + b - 1) // b


def _vmem_capacity_bytes():
    # Generation-aware VMEM capacity (128 MiB on v5e/v6e, 64 MiB per core on v7x).
    # Fall back to the conservative 64 MiB if the query is unavailable.
    try:
        return int(pltpu.get_tpu_info().vmem_capacity_bytes)
    except Exception:
        return 64 * 1024 * 1024


def _vmem_tile_bytes(rows, cols, dtype):
    # Padded VMEM footprint of a (rows, cols) tile: lanes pad to 128, sublanes pad to
    # the dtype's packing tile (8 for 4-byte, 16 for 2-byte, 32 for 1-byte).
    itemsize = jnp.dtype(dtype).itemsize
    sub = {4: 8, 2: 16, 1: 32}.get(itemsize, 8)
    return _round_up(rows, sub) * _round_up(cols, 128) * itemsize


def _cconv_gemm_kernel(p_ref, w_ref, b_ref, o_ref, *, half_cols, output_type):
    """One grid step = one lane-dense block-complex GEMM over `bm` packed pixel rows.

    p_ref: (bm, g*k_tap)      bf16  g pixels' im2col patches packed per row
    w_ref: (g*k_tap, n_w_pad) bf16  block-diag complex weight, cols = [all-re | all-im]
    b_ref: (1, n_w_pad)       f32   [(b_re - b_im) x g | (b_re + b_im) x g | 0-pad]
    o_ref: (bm, n_o_pad)      f32   lane-dense packed output rows
    """
    res = jnp.dot(p_ref[...], w_ref[...], preferred_element_type=jnp.float32)
    res = res + b_ref[...]                      # bias add stays in f32

    n_o = o_ref.shape[1]
    if output_type == 'complex':
        # Both the re and the im column groups are part of the packed output row.
        o_ref[...] = res[:, :n_o]
    else:
        val = res[:, :half_cols]                # "all-re" columns (128-aligned slice)
        if output_type == 'signed_norm':
            im = res[:, half_cols:2 * half_cols]
            val = jnp.sqrt(val * val + im * im) * jnp.sign(val)   # sqrt -> EUP slot
        if half_cols == n_o:
            o_ref[...] = val                    # unmasked 128-lane dense store
        else:
            # Two plain ref stores instead of a lane-misaligned concat rebuild.
            o_ref[:, :half_cols] = val
            o_ref[:, half_cols:] = jnp.zeros(
                (val.shape[0], n_o - half_cols), o_ref.dtype)


def complex_conv2d(in_re, in_im, w_re, w_im, b_re, b_im, *,
                   padding=(1, 1), output_type='complex',
                   compute_dtype=jnp.bfloat16, block_rows=None):
    """in_re/in_im: (N, C_in, H, W); w_*: (C_out, C_in, KH, KW); b_*: (C_out,).

    Matches ComplexConv2d with stride=1, dilation=1, groups=1 and the given padding.
    Pass compute_dtype=jnp.float32 if the (tiny) imaginary weights need full precision.
    """
    # TODO(synk): general stride / dilation / groups not implemented (stride=1 path only).
    if output_type not in ('complex', 'projection', 'signed_norm'):
        raise ValueError(f'Unsupported output_type: {output_type}')

    n, c_in, h, w = in_re.shape
    c_out, _, kh, kw = w_re.shape
    ph, pw = padding
    h_out = h + 2 * ph - kh + 1
    w_out = w + 2 * pw - kw + 1
    c2 = 2 * c_in
    k_tap = kh * kw * c2                       # im2col depth of one output pixel
    m = n * h_out * w_out                      # total output pixels

    # ---- output-lane packing factor ----
    # 'complex' writes (re|im) = 2*c_out values per pixel; the other modes write c_out.
    out_per_pix = 2 * c_out if output_type == 'complex' else c_out
    g = max(1, 128 // out_per_pix)             # pixels packed per 128-lane output row
    kg = g * k_tap                             # GEMM K (block-diagonal weight depth)
    n_w = g * 2 * c_out                        # GEMM N (re + im for all g pixels)
    n_w_pad = _round_up(n_w, 128)
    n_o = g * out_per_pix                      # useful output columns per packed row
    n_o_pad = _round_up(n_o, 128)
    half_cols = g * c_out                      # width of the "all-re" column group
    # TODO(synk): for 2*c_out > 128 on v6e/v7x consider rounding n_w_pad to 256 (MXU tile).

    # ---- wrapper-side layout plumbing (pure XLA: transpose / pad / concat / reshape) ----
    # NCHW -> NHWC, concatenate re|im on channels, spatial zero-pad.
    to_nhwc = lambda t: jnp.transpose(t, (0, 2, 3, 1))
    x_cat = jnp.concatenate([to_nhwc(in_re), to_nhwc(in_im)], axis=-1)
    x_cat = jnp.pad(x_cat, ((0, 0), (ph, ph), (pw, pw), (0, 0)))
    # Pre-im2col (tap-major, within a tap [re-ch | im-ch]) so the kernel's K dim arrives
    # lane-dense and no in-kernel relayout is needed.  This is the right trade for small
    # c_in (the reviewer's "pre-im2col" option).
    # TODO(synk): for large c_in / images switch to an in-kernel halo-tiled per-tap
    # accumulation to avoid the kh*kw HBM expansion of wrapper-side im2col.
    taps = [x_cat[:, i:i + h_out, j:j + w_out, :]
            for i in range(kh) for j in range(kw)]
    patches = jnp.concatenate(taps, axis=-1).reshape(m, k_tap)

    # Block-complex per-pixel weight: rows = (tap, [re|im] input ch), cols = [re | im] out.
    wre = jnp.transpose(w_re, (2, 3, 1, 0)).astype(jnp.float32)    # OIHW -> HWIO
    wim = jnp.transpose(w_im, (2, 3, 1, 0)).astype(jnp.float32)
    w_pix = jnp.concatenate(
        [jnp.concatenate([wre, wim], axis=-1),         # x_re rows:  [ w_re |  w_im]
         jnp.concatenate([-wim, wre], axis=-1)],       # x_im rows:  [-w_im |  w_re]
        axis=2).reshape(k_tap, 2 * c_out)
    # g-pixel block-diagonal weight, then permute columns to [re of all g pixels | im of
    # all g pixels] so the kernel's epilogue slices are 128-lane aligned.
    w_bd = jnp.kron(jnp.eye(g, dtype=jnp.float32), w_pix)           # (kg, g*2*c_out)
    w_bd = w_bd.reshape(kg, g, 2, c_out).transpose(0, 2, 1, 3).reshape(kg, n_w)
    w_bd = jnp.pad(w_bd, ((0, 0), (0, n_w_pad - n_w))).astype(compute_dtype)

    # Effective biases (module semantics): re gets b_re - b_im, im gets b_re + b_im.
    bre = b_re.astype(jnp.float32)
    bim = b_im.astype(jnp.float32)
    b_row = jnp.concatenate([jnp.tile(bre - bim, g), jnp.tile(bre + bim, g)])
    b_row = jnp.pad(b_row, (0, n_w_pad - n_w)).reshape(1, n_w_pad)

    # ---- row tiling: generation- and padding-aware VMEM budget, >= 2 grid steps ----
    m_grp = _cdiv(m, g)                                   # packed output rows in total
    bm_align = max(8, 32 // jnp.dtype(compute_dtype).itemsize)   # 16 for bf16, 8 for f32
    vmem_budget = int(0.8 * _vmem_capacity_bytes())       # ~51 MiB v7x, ~102 MiB v5e/v6e
    # Constant operands (weight + bias) are double-buffered by the default pipeline.
    # TODO(synk): single-buffer them (pl.BlockSpec(..., pipeline_mode=pl.Buffered(1)))
    # once c_in*c_out grows; at these sizes the saving is negligible.
    const_bytes = (2 * _vmem_tile_bytes(kg, n_w_pad, compute_dtype)
                   + 2 * _vmem_tile_bytes(1, n_w_pad, jnp.float32))
    row_bytes = (2 * jnp.dtype(compute_dtype).itemsize * _round_up(kg, 128)  # patch, 2 bufs
                 + 2 * 4 * n_o_pad                                           # out, 2 bufs
                 + 4 * n_w_pad)                                              # f32 GEMM result
    if block_rows is None:
        per_step_budget = max(vmem_budget // 3 - const_bytes, row_bytes * bm_align)
        bm_budget = max(bm_align, per_step_budget // row_bytes // bm_align * bm_align)
        # Aim for ~4 grid steps so both v7x TensorCores get work on the "parallel" axis
        # and prefetch/writeback overlaps compute; never exceed the VMEM budget.
        bm_target = max(bm_align, _round_up(_cdiv(m_grp, 4), bm_align))
        bm = min(bm_budget, bm_target)
    else:
        bm = max(bm_align, _round_up(block_rows, bm_align))
    bm = min(bm, _round_up(m_grp, bm_align))
    steps = _cdiv(m_grp, bm)
    m_grp_pad = steps * bm

    patches = jnp.pad(patches, ((0, m_grp_pad * g - m), (0, 0))).astype(compute_dtype)
    patches = patches.reshape(m_grp_pad, kg)

    kernel = functools.partial(_cconv_gemm_kernel, half_cols=half_cols,
                               output_type=output_type)
    out = pl.pallas_call(
        kernel,
        out_shape=jax.ShapeDtypeStruct((m_grp_pad, n_o_pad), jnp.float32),
        grid_spec=pltpu.PrefetchScalarGridSpec(
            num_scalar_prefetch=0,
            grid=(steps,),
            in_specs=[
                pl.BlockSpec((bm, kg), lambda s: (s, 0)),
                pl.BlockSpec((kg, n_w_pad), lambda s: (0, 0)),
                pl.BlockSpec((1, n_w_pad), lambda s: (0, 0)),
            ],
            out_specs=pl.BlockSpec((bm, n_o_pad), lambda s: (s, 0)),
        ),
        compiler_params=pltpu.CompilerParams(
            dimension_semantics=("parallel",),            # row blocks are independent
            vmem_limit_bytes=vmem_budget,
        ),
    )(patches, w_bd, b_row)

    # ---- unpack: undo the g-pixel lane packing, back to NCHW ----
    def unpack(cols):
        pix = cols.reshape(m_grp_pad * g, c_out)[:m]
        return jnp.transpose(pix.reshape(n, h_out, w_out, c_out), (0, 3, 1, 2))

    if output_type == 'complex':
        return unpack(out[:, :half_cols]), unpack(out[:, half_cols:2 * half_cols])
    # 'projection' and 'signed_norm' both live in the first half_cols columns.
    return unpack(out[:, :half_cols])


if __name__ == "__main__":
    key = jax.random.PRNGKey(0)
    k_xre, k_xim, k_wre, k_wim, k_bre, k_bim = jax.random.split(key, 6)

    N, C_IN, C_OUT, H, W, K = 2, 4, 8, 16, 16, 3

    in_re = jax.random.normal(k_xre, (N, C_IN, H, W), dtype=jnp.float32)
    in_im = jax.random.normal(k_xim, (N, C_IN, H, W), dtype=jnp.float32)

    # conv2d_re: standard Conv2d-style init.
    bound = 1.0 / (C_IN * K * K) ** 0.5
    w_re = jax.random.uniform(k_wre, (C_OUT, C_IN, K, K), jnp.float32, -bound, bound)
    b_re = jax.random.uniform(k_bre, (C_OUT,), jnp.float32, -bound, bound)
    # conv2d_im: normal(0, 1e-4) weights. Its bias is zero-init in the module but
    # trainable, so use a nonzero value here to exercise the bias path.
    w_im = 1e-4 * jax.random.normal(k_wim, (C_OUT, C_IN, K, K), dtype=jnp.float32)
    b_im = 0.1 * jax.random.normal(k_bim, (C_OUT,), dtype=jnp.float32)

    # --- Pallas kernel ---
    out_re, out_im = complex_conv2d(in_re, in_im, w_re, w_im, b_re, b_im,
                                    padding=(1, 1), output_type='complex')
    out_pr = complex_conv2d(in_re, in_im, w_re, w_im, b_re, b_im,
                            padding=(1, 1), output_type='projection')
    out_sn = complex_conv2d(in_re, in_im, w_re, w_im, b_re, b_im,
                            padding=(1, 1), output_type='signed_norm')
    jax.block_until_ready((out_re, out_im, out_pr, out_sn))

    # --- Pure-JAX reference (module semantics), with bf16-rounded operands to match
    #     the kernel's compute dtype (accumulation in f32 on both sides). ---
    def conv(x, wgt, b):
        y = jax.lax.conv_general_dilated(
            x.astype(jnp.bfloat16), wgt.astype(jnp.bfloat16),
            window_strides=(1, 1), padding=((1, 1), (1, 1)),
            dimension_numbers=('NCHW', 'OIHW', 'NCHW'),
            preferred_element_type=jnp.float32)
        return y + b.reshape(1, -1, 1, 1)

    ref_re = conv(in_re, w_re, b_re) - conv(in_im, w_im, b_im)
    ref_im = conv(in_im, w_re, b_re) + conv(in_re, w_im, b_im)
    ref_norm = jnp.sqrt(ref_re ** 2 + ref_im ** 2)
    ref_sn = ref_norm * jnp.sign(ref_re)

    assert out_re.shape == (N, C_OUT, H, W) and out_im.shape == (N, C_OUT, H, W)
    assert out_pr.shape == (N, C_OUT, H, W) and out_sn.shape == (N, C_OUT, H, W)
    assert jnp.allclose(out_re, ref_re, rtol=2e-3, atol=2e-3)
    assert jnp.allclose(out_im, ref_im, rtol=2e-3, atol=2e-3)
    assert jnp.allclose(out_pr, ref_re, rtol=2e-3, atol=2e-3)
    # signed_norm: the sign can legitimately flip where out_re ~ 0; check the magnitude
    # everywhere and the signed value wherever the sign is numerically stable.
    assert jnp.allclose(jnp.abs(out_sn), ref_norm, rtol=2e-3, atol=2e-3)
    stable = jnp.abs(ref_re) > 1e-2
    assert jnp.allclose(jnp.where(stable, out_sn, ref_sn), ref_sn, rtol=2e-3, atol=2e-3)

    print("KERNEL_OK")
</pallas_src>

<mosaic_0001>
module attributes {stable_mosaic.version = 11 : i64} {
  func.func @_cconv_gemm_kernel(%arg0: i32, %arg1: memref<16x576xbf16, #tpu.memory_space<vmem>>, %arg2: memref<576x128xbf16, #tpu.memory_space<vmem>>, %arg3: memref<1x128xf32, #tpu.memory_space<vmem>>, %arg4: memref<16x128xf32, #tpu.memory_space<vmem>>) attributes {dimension_semantics = [#tpu.dimension_semantics<parallel>], iteration_bounds = array<i64: 4>, scalar_prefetch = 0 : i64, scratch_operands = 0 : i64, tpu.core_type = #tpu.core_type<tc>, window_params = [{transform_indices = @transform_0, window_bounds = array<i64: 16, 576>}, {pipeline_mode = #tpu.pipeline_mode<synchronous>, transform_indices = @transform_1, window_bounds = array<i64: 576, 128>}, {pipeline_mode = #tpu.pipeline_mode<synchronous>, transform_indices = @transform_2, window_bounds = array<i64: 1, 128>}, {transform_indices = @transform_3, window_bounds = array<i64: 16, 128>}]} {
    %c0 = arith.constant 0 : index
    %c0_0 = arith.constant 0 : index
    %0 = vector.load %arg1[%c0, %c0_0] : memref<16x576xbf16, #tpu.memory_space<vmem>>, vector<16x576xbf16>
    %c0_1 = arith.constant 0 : index
    %c0_2 = arith.constant 0 : index
    %1 = vector.load %arg2[%c0_1, %c0_2] : memref<576x128xbf16, #tpu.memory_space<vmem>>, vector<576x128xbf16>
    %cst = arith.constant dense<0.000000e+00> : vector<16x128xf32>
    %2 = tpu.matmul %0, %1, %cst {dimension_numbers = #tpu.dot_dimension_numbers<[1], [0], [0], [1], [0, 0, 1, 1], [], []>} : vector<16x576xbf16>, vector<576x128xbf16>, vector<16x128xf32> -> vector<16x128xf32>
    %c0_3 = arith.constant 0 : index
    %c0_4 = arith.constant 0 : index
    %3 = vector.load %arg3[%c0_3, %c0_4] : memref<1x128xf32, #tpu.memory_space<vmem>>, vector<1x128xf32>
    %4 = vector.broadcast %3 : vector<1x128xf32> to vector<16x128xf32>
    %5 = arith.addf %2, %4 : vector<16x128xf32>
    %c0_5 = arith.constant 0 : index
    %c0_6 = arith.constant 0 : index
    %6 = vector.load %arg4[%c0_5, %c0_6] : memref<16x128xf32, #tpu.memory_space<vmem>>, vector<16x128xf32>
    tpu.vector_store %arg4[%c0_5, %c0_6], %5 {strides = array<i32>} : memref<16x128xf32, #tpu.memory_space<vmem>>, vector<16x128xf32>,
    return
  }
  func.func @transform_0(%arg0: i32) -> (i32, i32) {
    %c0_i32 = arith.constant 0 : i32
    %c0_i32_0 = arith.constant 0 : i32
    return %arg0, %c0_i32 : i32, i32
  }
  func.func @transform_1(%arg0: i32) -> (i32, i32) {
    %c0_i32 = arith.constant 0 : i32
    %c0_i32_0 = arith.constant 0 : i32
    %c0_i32_1 = arith.constant 0 : i32
    return %c0_i32, %c0_i32_0 : i32, i32
  }
  func.func @transform_2(%arg0: i32) -> (i32, i32) {
    %c0_i32 = arith.constant 0 : i32
    %c0_i32_0 = arith.constant 0 : i32
    %c0_i32_1 = arith.constant 0 : i32
    return %c0_i32, %c0_i32_0 : i32, i32
  }
  func.func @transform_3(%arg0: i32) -> (i32, i32) {
    %c0_i32 = arith.constant 0 : i32
    %c0_i32_0 = arith.constant 0 : i32
    return %arg0, %c0_i32 : i32, i32
  }
}

</mosaic_0001>

<bundles_post_ra>
// kernel: tpu_custom_call.1
= control target key start
LH: loop header
LB: loop body
LE: loop exit
PB: predicated region body
PF: predicated region fallthrough
CT: control target
= control target key end

     0   :  { %8 = vsyncpa [#allocation3], 0  ;;  %s1355_s0 = inlined_call_operand.hbm [shape: bf16[64,576], index: 0, kind: input, shape index: {}]   ;;  %s1356_s1 = inlined_call_operand.hbm [shape: bf16[576,128], index: 1, kind: input, shape index: {}]   ;;  %s1357_s2 = inlined_call_operand.vmem [shape: f32[1,128], index: 2, kind: input, shape index: {}]   ;;  %s1358_s3 = inlined_call_operand.hbm [shape: f32[64,128], index: 3, kind: output, shape index: {}]  }
   0x1   :  { %10 = vsyncpa [#allocation3 + $0x1], 0 }
   0x2   :  { %11 = vsyncpa [#allocation6], 0 }
   0x3   :  { %12 = vsyncpa [#allocation4], 0 }
   0x4   :  { %14 = vsyncpa [#allocation4 + $0x1], 0  ;;  %s1152_s12 = smov 0   ;;  %s1154_s13 = smov 0  }
   0x5   :  { %s1156_s14 = smov 0   ;;  %s1158_s15 = smov 0  }
   0x6 LB: > { %s1173_s16 = sadd.s32 4294967295, %s1119_s15   ;;  %s760_s17 = sadd.s32 4294967294, %s1119_s15   ;;  %s1119_s15 = sphi %s1158_s15, %s1377_s15   ;;  %s1115_s14 = sphi %s1156_s14, %s1376_s14   ;;  %s1111_s13 = sphi %s1154_s13, %s1375_s13   ;;  %s1107_s12 = sphi %s1152_s12, %s1374_s12  }
   0x7   : > { %p40_p0 = scmp.ne.s32.totalorder %s1111_s13, %s1107_s12  ;;  %p1359_p1 = scmp.eq.s32.totalorder %s1173_s16, 0 }
   0x8   : > { %p112_p3 = scmp.eq.s32.totalorder %s760_s17, 3  ;;  %p761_p5 = scmp.ge.s32.totalorder %s1119_s15, 1 }
   0x9   : > { %p1182_p4 = por %p1359_p1, %p40_p0  ;;  %p119_p7 = scmp.lt.s32.totalorder %s1119_s15, 5 }
   0xa   : > { %p1187_p6 = por %p112_p3, %p40_p0  ;;  %s1121_s21 = smov [#allocation5]  }
   0xb   : > { %s1362_s18 = scalar_select %p1182_p4, 1, 0 }
   0xc   : > { %s1363_s19 = scalar_select %p1187_p6, 1, 0 }
   0xd   : > { %p1192_p8 = pnand %p761_p5, %p119_p7  ;;  %s131_s22 = sshll.u32 %s1121_s21, 4  ;;  %s132_s22 = int_to_ptr.vmem [resolvable:$true] %s131_s22 }
   0xe   : > { %s1205_s24 = sadd.s32 1, %s1119_s15   ;;  %s27_s25 = sadd.s32 1, %s1115_s14 }
   0xf   : > { %s1364_s20 = scalar_select %p1192_p8, 1, 0 }
  0x10   : > { %p891_p9 = pneg %p1192_p8  ;;  %s24_s26 = ssub.s32 %s1119_s15, %s1205_s24 }
  0x11   : > { %s991_s29 = scalar_lea.hbm %s1356_s1, 4608 }
  0x12   : > { %p1200_p10 = pnand %p891_p9, %p1359_p1  ;;  %p992_p11 = scmp.ne.s32.totalorder %s1356_s1, %s991_s29 }
  0x13   : > { %p998_p3 = scmp.lt.u32.totalorder %s991_s29, %s1356_s1 }
  0x14   : > { %p993_p12 = pneg %p1200_p10 }
  0x16   : > { %p994_p13 = pnand %p993_p12, %p992_p11 }
  0x18   : > { %p995_p0 = pneg %p994_p13 }
  0x1a   : > { %p1000_p5 = pnand %p998_p3, %p995_p0 }
  0x1c   : > { %1003 = shalt.err (!%p1000_p5)
}
  0x1d   : > { %s1004_s7 = scalar_lea.vmem %s132_s22, 4608  ;;  %p1012_p2 = scmp.lt.s32.totalorder %s132_s22, %s132_s22 }
  0x1e   : > { %p1005_p7 = scmp.ne.s32.totalorder %s132_s22, %s1004_s7  ;;  %p1013_p6 = scmp.lt.s32.totalorder %s1004_s7, %s1004_s7 }
  0x20   : > { %p1007_p9 = pnand %p1005_p7, %p993_p12  ;;  %p1014_p4 = por %p1013_p6, %p1012_p2 }
  0x22   : > { %p1008_p1 = pneg %p1007_p9 }
  0x24   : > { %p1015_p8 = pnand %p1014_p4, %p1008_p1 }
  0x26   : > { %1018 = shalt.err (!%p1015_p8)
}
  0x27   : > { %s1122_s8 = smov 64   ;;  %s1123_s9 = smov 4  }
  0x28   : > { %894 = dma.hbm_to_vmem [thread:$0]  (!%p1200_p10), %s1356_s1, 4608, %s132_s22, [#allocation6], %s1122_s8, %s1122_s8, %s1123_s9  }
  0x29   : > { %p25_p11 = scmp.eq.s32.totalorder %s24_s26, 0  ;;  %p34_p2 = scmp.ne.s32.totalorder %s1115_s14, %s1111_s13 }
  0x2a   : > { %p35_p1 = scmp.eq.s32.totalorder %s1119_s15, 0  ;;  %p904_p4 = scmp.lt.s32.totalorder %s1119_s15, 4 }
  0x2b   : > { %s1231_s17 = scalar_select %p25_p11, %s1115_s14, %s27_s25  }
  0x2c   : > { %p36_p6 = por %p35_p1, %p34_p2  ;;  %p1366_p8 = scmp.eq.s32.totalorder %s1173_s16, 3 }
  0x2d   : > { %s148_s27 = sand.u32 1, %s1115_s14   ;;  %s881_s28 = smul.u32 640, %s1119_s15 }
  0x2e   : > { %p1235_p12 = por %p1366_p8, %p34_p2  ;;  %s880_s29 = smul.u32 40, %s148_s27 }
  0x2f   : > { %s1244_s4 = scalar_lea.hbm %s1355_s0, %s881_s28  ;;  %p1246_p10 = pnand %p904_p4, %p36_p6 }
  0x30   : > { %s152_s25 = scalar_lea.vmem [#allocation2], %s880_s29  ;;  %s1252_s5 = scalar_lea.sflag [#allocation3], %s148_s27 }
  0x31   : > { %s160_s26 = sshll.u32 %s152_s25, 4  ;;  %s1019_s6 = scalar_lea.hbm %s1244_s4, 640  ;;  %s1250_s26 = int_to_ptr.vmem [resolvable:$true] %s160_s26 }
  0x32   : > { %p1020_p13 = scmp.ne.s32.totalorder %s1244_s4, %s1019_s6  ;;  %p1021_p0 = pneg %p1246_p10 }
  0x33   : > { %s1024_s9 = scalar_lea.hbm %s1355_s0, 2560  ;;  %p1025_p7 = scmp.lt.u32.totalorder %s1244_s4, %s1355_s0 }
  0x34   : > { %p1022_p3 = pnand %p1021_p0, %p1020_p13  ;;  %p1026_p9 = scmp.lt.u32.totalorder %s1024_s9, %s1019_s6 }
  0x35   : > { %p1028_p2 = scmp.lt.u32.totalorder %s1019_s6, %s1244_s4 }
  0x36   : > { %p1023_p5 = pneg %p1022_p3  ;;  %p1027_p11 = por %p1026_p9, %p1025_p7 }
  0x38   : > { %p1029_p1 = por %p1028_p2, %p1027_p11 }
  0x3a   : > { %p1030_p4 = pnand %p1029_p1, %p1023_p5 }
  0x3c   : > { %1033 = shalt.err (!%p1030_p4)
}
  0x3d   : > { %s1034_s27 = scalar_lea.vmem %s1250_s26, 640  ;;  %s1124_s28 = smov [#allocation2]  }
  0x3e   : > { %p1035_p6 = scmp.ne.s32.totalorder %s1250_s26, %s1034_s27  ;;  %s1039_s29 = sshll.u32 %s1124_s28, 4  ;;  %s1040_s29 = int_to_ptr.vmem [resolvable:$false] %s1039_s29 }
  0x3f   : > { %s1041_s23 = scalar_lea.vmem %s1040_s29, 1280  ;;  %p1042_p3 = scmp.lt.s32.totalorder %s1250_s26, %s1040_s29 }
  0x40   : > { %p1037_p8 = pnand %p1035_p6, %p1021_p0  ;;  %p1043_p7 = scmp.lt.s32.totalorder %s1041_s23, %s1034_s27 }
  0x42   : > { %p1038_p13 = pneg %p1037_p8  ;;  %p1044_p9 = por %p1043_p7, %p1042_p3 }
  0x44   : > { %p1045_p11 = pnand %p1044_p9, %p1038_p13 }
  0x46   : > { %1048 = shalt.err (!%p1045_p11)
}
  0x47   : > { %s1125_s30 = smov 320   ;;  %s1126_s25 = smov 20  }
  0x48   : > { %898 = dma.hbm_to_vmem [thread:$0]  (!%p1246_p10), %s1244_s4, 640, %s1250_s26, %s1252_s5, %s1125_s30, %s1125_s30, %s1126_s25  }
  0x49   : > { %p1369_p0 = scmp.ne.s32.totalorder %s1364_s20, 0 }
  0x4a   : > { %s1283_s6 = sand.u32 (!%p1369_p0), 1, %s1111_s13   ;;  %p1370_p5 = scmp.ne.s32.totalorder (!%p1369_p0), %s1362_s18, 0 }
  0x4b   : > { %172 = sbr.rel (%p1369_p0) target bundleno = 366 (0x16e), region = 32  ;;  %s175_s8 = scalar_lea.sflag (!%p1369_p0), [#allocation3], %s1283_s6 }
  0x4c   : > { %s882_s7 = smul.u32 (!%p1369_p0), 40, %s1283_s6 }
  0x4e   : > { %s1287_s9 = scalar_lea.vmem (!%p1369_p0), [#allocation2], %s882_s7 }
  0x52   : > { %1094 = dma.done.wait (%p1370_p5), %s175_s8, 640  }
  0x53   : > { %1096 = vsyncadd (%p1370_p5), %s175_s8, 4294966656  ;;  %p1371_p10 = scmp.eq.s32.totalorder %s1173_s16, 0 }
  0x55   : > { %1098 = dma.done.wait (%p1371_p10), [#allocation6], 4608   ;;  %p1372_p2 = pmov %p1371_p10 }
  0x56   : > { %v948_v0 = vld [vmem:[#allocation5 + $0x40] sm:$0xff]   ;;  %v952_v4 = vld [vmem:[#allocation5 + $0x48] sm:$0xff]   ;;  %v956_v8 = vld [vmem:[#allocation5 + $0x50] sm:$0xff]   ;;  %v1127_v33 = vmov 0.0   ;;  %vm1128_vm0 = vmmov 0   ;;  %vm534_vm1 = vcmask 523264  }
  0x57   : > { %1100 = vsyncadd (%p1372_p2), [#allocation6], 4294962688  ;;  %v949_v1 = vld [vmem:[#allocation5] sm:$0xff]   ;;  %819 = vmatprep.subr.bf16.mxu0 %v948_v0  ;;  %v953_v5 = vld [vmem:[#allocation5 + $0x8] sm:$0xff]   ;;  %s769_s4 = sshll.u32 %s1283_s6, 4  ;;  %s818_s5 = sshll.u32 %s1173_s16, 8 }
  0x58   : > { %v950_v2 = vld [vmem:[#allocation5 + $0xc0] sm:$0xff]   ;;  %820 = vmatpush3.bf16.msra.mxu0 %v949_v1  ;;  %v954_v6 = vld [vmem:[#allocation5 + $0xc8] sm:$0xff]   ;;  %v957_v9 = vld [vmem:[#allocation5 + $0x10] sm:$0xff]   ;;  %s204_s22 = scalar_lea.vmem [#allocation7], %s769_s4  ;;  %s1312_s27 = scalar_lea.hbm %s1358_s3, %s818_s5 }
  0x59   : > { %v951_v3 = vld [vmem:[#allocation5 + $0x80] sm:$0xff]   ;;  %841 = vmatprep.subr.bf16.mxu1 %v950_v2  ;;  %821 = vmatprep.subr.bf16.mxu0 %v952_v4  ;;  %v955_v7 = vld [vmem:[#allocation5 + $0x88] sm:$0xff]   ;;  %v958_v10 = vld [vmem:[#allocation5 + $0xd0] sm:$0xff]   ;;  %s677_s26 = sshll.u32 %s204_s22, 4  ;;  %s664_s28 = scalar_lea.sflag [#allocation4], %s1283_s6  ;;  %s1307_s26 = int_to_ptr.vmem [resolvable:$true] %s677_s26 }
  0x5a   : > { %842 = vmatpush3.bf16.msra.mxu1 %v951_v3  ;;  %v959_v11 = vld [vmem:[#allocation5 + $0x90] sm:$0xff]   ;;  %v960_v12 = vld [vmem:[#allocation5 + $0x58] sm:$0xff]   ;;  %v964_v16 = vld [vmem:[#allocation5 + $0x60] sm:$0xff]   ;;  %s1049_s16 = scalar_lea.vmem %s1307_s26, 256  ;;  %s1129_s29 = smov [#allocation7]  }
  0x5b   : > { %843 = vmatprep.subr.bf16.mxu1 %v954_v6  ;;  %v961_v13 = vld [vmem:[#allocation5 + $0x18] sm:$0xff]   ;;  %v965_v17 = vld [vmem:[#allocation5 + $0x20] sm:$0xff]   ;;  %v968_v20 = vld [vmem:[#allocation5 + $0x68] sm:$0xff]   ;;  %p1050_p1 = scmp.ne.s32.totalorder %s1307_s26, %s1049_s16  ;;  %s1053_s23 = sshll.u32 %s1129_s29, 4  ;;  %s1054_s23 = int_to_ptr.vmem [resolvable:$false] %s1053_s23 }
  0x5c   : > { %822 = vmatpush3.bf16.msra.mxu0 %v953_v5  ;;  %v962_v14 = vld [vmem:[#allocation5 + $0xd8] sm:$0xff]   ;;  %v966_v18 = vld [vmem:[#allocation5 + $0xe0] sm:$0xff]   ;;  %v969_v21 = vld [vmem:[#allocation5 + $0x28] sm:$0xff]   ;;  %s1055_s30 = scalar_lea.vmem %s1054_s23, 512  ;;  %p1056_p8 = scmp.lt.s32.totalorder %s1307_s26, %s1054_s23 }
  0x5d   : > { %823 = vmatprep.subr.bf16.mxu0 %v956_v8  ;;  %v963_v15 = vld [vmem:[#allocation5 + $0x98] sm:$0xff]   ;;  %v967_v19 = vld [vmem:[#allocation5 + $0xa0] sm:$0xff]   ;;  %v970_v22 = vld [vmem:[#allocation5 + $0xe8] sm:$0xff]   ;;  %p1051_p4 = pnand %p1050_p1, %p1235_p12  ;;  %p1057_p13 = scmp.lt.s32.totalorder %s1055_s30, %s1049_s16 }
  0x5e   : > { %844 = vmatpush3.bf16.msra.mxu1 %v955_v7  ;;  %v971_v23 = vld [vmem:[#allocation5 + $0xa8] sm:$0xff]   ;;  %v972_v24 = vld [vmem:[#allocation5 + $0x70] sm:$0xff]   ;;  %v976_v28 = vld [vmem:[#allocation5 + $0x78] sm:$0xff]  }
  0x5f   : > { %845 = vmatprep.subr.bf16.mxu1 %v958_v10  ;;  %v973_v25 = vld [vmem:[#allocation5 + $0x30] sm:$0xff]   ;;  %v977_v29 = vld [vmem:[#allocation5 + $0x38] sm:$0xff]   ;;  %v986_v37 = vld [vmem:[#allocation5 + $0x100] sm:$0xff]   ;;  %p1052_p6 = pneg %p1051_p4  ;;  %p1058_p3 = por %p1057_p13, %p1056_p8 }
  0x60   : > { %824 = vmatpush3.bf16.msra.mxu0 %v957_v9  ;;  %v974_v26 = vld [vmem:[#allocation5 + $0xf0] sm:$0xff]   ;;  %v978_v30 = vld [vmem:[#allocation5 + $0xf8] sm:$0xff]   ;;  %v987_v38 = vld [vmem:[#allocation5 + $0x108] sm:$0xff]  }
  0x61   : > { %825 = vmatprep.subr.bf16.mxu0 %v960_v12  ;;  %v975_v27 = vld [vmem:[#allocation5 + $0xb0] sm:$0xff]   ;;  %v982_v34 = vld [vmem:[#allocation5 + $0xb8] sm:$0xff]   ;;  %p1059_p7 = pnand %p1058_p3, %p1052_p6 }
  0x62   : > { %846 = vmatpush3.bf16.msra.mxu1 %v959_v11  ;;  %v979_v31 = vld [vmem:[%s1287_s9] ss:$20 sps:$4 sm:$0xff]   ;;  %v981_v32 = vld [vmem:[%s1287_s9 + $0x4] ss:$20 sps:$4 sm:$0xff]   ;;  %v983_v35 = vld [vmem:[%s1287_s9 + $0x8] ss:$20 sps:$4 sm:$0xff]  }
  0x63   : > { %847 = vmatprep.subr.bf16.mxu1 %v962_v14  ;;  %570 = vmatprep.mubr.bf16.mxu0 %v981_v32  ;;  %v985_v36 = vld [vmem:[%s1287_s9 + $0xc] ss:$20 sps:$4 sm:$0xff]   ;;  %v990_v41 = vld [vmem:[%s1287_s9 + $0x10] ss:$20 sps:$4 sm:$0xff]  }
  0x64   : > { %826 = vmatpush3.bf16.msra.mxu0 %v961_v13  ;;  %611 = vmatprep.mubr.bf16.mxu1 %v985_v36  ;;  %v988_v39 = vld [vmem:[#allocation5 + $0x110] sm:$0xff]   ;;  %v989_v40 = vld [vmem:[#allocation5 + $0x118] sm:$0xff]  }
  0x65   : > { %827 = vmatprep.subr.bf16.mxu0 %v964_v16  ;;  %v770_v43 = vld [vmem:[%s1357_s2] ss:$0 sm:$0xff] }
  0x66   : > { %848 = vmatpush3.bf16.msra.mxu1 %v963_v15 }
  0x67   : > { %849 = vmatprep.subr.bf16.mxu1 %v966_v18 }
  0x68   : > { %828 = vmatpush3.bf16.msra.mxu0 %v965_v17 }
  0x69   : > { %829 = vmatprep.subr.bf16.mxu0 %v968_v20 }
  0x6a   : > { %850 = vmatpush3.bf16.msra.mxu1 %v967_v19 }
  0x6b   : > { %851 = vmatprep.subr.bf16.mxu1 %v970_v22 }
  0x6c   : > { %830 = vmatpush3.bf16.msra.mxu0 %v969_v21 }
  0x6d   : > { %831 = vmatprep.subr.bf16.mxu0 %v972_v24 }
  0x6e   : > { %852 = vmatpush3.bf16.msra.mxu1 %v971_v23 }
  0x6f   : > { %853 = vmatprep.subr.bf16.mxu1 %v974_v26 }
  0x70   : > { %832 = vmatpush3.bf16.msra.mxu0 %v973_v25 }
  0x71   : > { %833 = vmatprep.subr.bf16.mxu0 %v976_v28 }
  0x72   : > { %854 = vmatpush3.bf16.msra.mxu1 %v975_v27 }
  0x73   : > { %855 = vmatprep.subr.bf16.mxu1 %v978_v30 }
  0x74   : > { %834 = vmatpush3.bf16.msra.mxu0 %v977_v29 }
  0x75   : > { %868 = vmatprep.subr.bf16.mxu0 %v1127_v33 }
  0x76   : > { %856 = vmatpush3.bf16.msra.mxu1 %v982_v34 }
  0x77   : > { %571 = vmatmul.mubr.bf16.vlgmr.msra.gmra.mrb[0].mxu0 %v979_v31 }
  0x78   : > { %876 = vmatprep.mubr.msk.bf16.mxu0 %vm1128_vm0, %v1127_v33  ;;  %869 = vmatpush3.bf16.msra.mxu0 %v986_v37 }
  0x79   : > { %612 = vmatmul.mubr.bf16.vlgmr.msra.gmra.mrb[0].mxu1 %v983_v35  ;;  %870 = vmatprep.subr.bf16.mxu0 %v1127_v33 }
  0x7c   : > { %871 = vmatpush3.bf16.msra.mxu0 %v987_v38 }
  0x7d   : > { %872 = vmatprep.subr.bf16.mxu0 %v1127_v33 }
  0x80   : > { %873 = vmatpush3.bf16.msra.mxu0 %v988_v39 }
  0x81   : > { %874 = vmatprep.subr.bf16.mxu0 %v1127_v33 }
  0x84   : > { %875 = vmatpush3.bf16.msra.mxu0 %v989_v40 }
  0x87   : > { %877 = vmatmul.mubr.msk.bf16.vlgmr.msra.gmra.mrb[4].mxu0 %vm534_vm1, %v990_v41 }
 0x14a   : > { %v835_v42 = vpop.f32.mrb[0].mxu0 }
 0x14b   : > { %v836_v44 = vpop.f32.mrb[1].mxu0 }
 0x14c   : > { %v837_v45 = vadd.f32 %v836_v44, %v835_v42  ;;  %v838_v46 = vpop.f32.mrb[2].mxu0  ;;  %v857_v47 = vpop.f32.mrb[0].mxu1 }
 0x14d   : > { %v839_v48 = vpop.f32.mrb[3].mxu0  ;;  %v858_v51 = vpop.f32.mrb[1].mxu1 }
 0x14e   : > { %v573_v49 = vadd.f32 %v837_v45, %v770_v43  ;;  %v840_v50 = vadd.f32 %v839_v48, %v838_v46  ;;  %v859_v52 = vadd.f32 %v858_v51, %v857_v47  ;;  %v860_v53 = vpop.f32.mrb[2].mxu1 }
 0x14f   : > { %v861_v55 = vpop.f32.mrb[3].mxu1 }
 0x150   : > { %v576_v54 = vadd.f32 %v840_v50, %v770_v43  ;;  %v862_v56 = vadd.f32 %v861_v55, %v860_v53  ;;  %v614_v57 = vadd.f32 %v859_v52, %v573_v49 }
 0x152   : > { %v617_v58 = vadd.f32 %v862_v56, %v576_v54 }
 0x15a   : > { %v654_v59 = vpop.f32.mrb[4].mxu0 }
 0x15b   : > { %v655_v60 = vadd.f32 %v654_v59, %v614_v57  ;;  %v878_v61 = vpop.f32.mrb[5].mxu0 }
 0x15c   : > { %v657_v62 = vpop.f32.mrb[6].mxu0 }
 0x15d   : > { %661 = vst [vmem:[%s204_s22] sm:$0xff] %v655_v60  ;;  %v658_v63 = vadd.f32 %v657_v62, %v617_v58  ;;  %v879_v0 = vpop.f32.mrb[7].mxu0 }
 0x15f   : > { %662 = vst [vmem:[%s204_s22 + $0x8] sm:$0xff] %v658_v63 }
 0x160   : > { %1062 = shalt.err (!%p1059_p7)
}
 0x161   : > { %s1063_s25 = scalar_lea.hbm %s1312_s27, 256  ;;  %s1067_s9 = scalar_lea.hbm %s1358_s3, 1024 }
 0x162   : > { %p1064_p9 = scmp.ne.s32.totalorder %s1312_s27, %s1063_s25  ;;  %p1068_p5 = scmp.lt.u32.totalorder %s1312_s27, %s1358_s3 }
 0x163   : > { %p1069_p10 = scmp.lt.u32.totalorder %s1067_s9, %s1063_s25  ;;  %p1071_p1 = scmp.lt.u32.totalorder %s1063_s25, %s1312_s27 }
 0x164   : > { %p1065_p11 = pnand %p1064_p9, %p1235_p12 }
 0x165   : > { %p1070_p2 = por %p1069_p10, %p1068_p5 }
 0x166   : > { %p1066_p0 = pneg %p1065_p11 }
 0x167   : > { %p1072_p4 = por %p1071_p1, %p1070_p2 }
 0x169   : > { %p1073_p6 = pnand %p1072_p4, %p1066_p0 }
 0x16b   : > { %1076 = shalt.err (!%p1073_p6)
}
 0x16c   : > { %s1130_s4 = smov 128   ;;  %s1131_s22 = smov 8  }
 0x16d   : > { %889 = dma.vmem_to_hbm [thread:$0]  (%p1235_p12), %s1307_s26, 256, %s1312_s27, %s664_s28, %s1130_s4, %s1130_s4, %s1131_s22  }
 0x16e PF: > { %p906_p8 = scmp.ge.s32.totalorder %s1119_s15, 2  ;;  %s692_s5 = sand.u32 1, %s1107_s12  }
 0x16f   : > { %p1373_p13 = scmp.ne.s32.totalorder %s1363_s19, 0  ;;  %s693_s10 = scalar_lea.sflag [#allocation4], %s692_s5 }
 0x171   : > { %p900_p3 = pnand %p906_p8, %p1373_p13 }
 0x173   : > { %1102 = dma.done.wait (!%p900_p3), %s693_s10, 256  }
 0x174   : > { %1104 = vsyncadd (!%p900_p3), %s693_s10, 4294967040  ;;  %p17_p7 = scmp.ge.s32.totalorder %s1205_s24, 6   ;;  %s1374_s12 = smov %s1111_s13 }
 0x175   : > { %s1375_s13 = smov %s1115_s14  ;;  %s1376_s14 = smov %s1231_s17 }
 0x176   : > { %s1377_s15 = smov %s1205_s24  ;;  %19 = sbr.rel (!%p17_p7) target bundleno = 6 (0x6), region = 81 }
 0x17d   :  { %698 = vsyncpa [#allocation3], 1 }
 0x17e   :  { %700 = vsyncpa [#allocation3 + $0x1], 1 }
 0x17f   :  { %701 = vsyncpa [#allocation6], 1 }
 0x180   :  { %702 = vsyncpa [#allocation4], 1 }
 0x181   :  { %704 = vsyncpa [#allocation4 + $0x1], 1 }

</bundles_post_ra>
